<compile_context>
chip_gen: v6e
topology: v6e:2x2x1
jax: 0.10.0
libtpu: 0.0.40
codegen_flags: <defaults>
</compile_context>

<pallas_src>
import math

import jax
import jax.numpy as jnp
from jax.experimental import pallas as pl
from jax.experimental.pallas import tpu as pltpu

_SHIFT = math.log(2.0)
_LANES = 128


def _shifted_softplus_kernel(x_ref, o_ref):
    # Numerically stable softplus: max(x, 0) + log1p(exp(-|x|)), computed in f32.
    x = x_ref[...].astype(jnp.float32)
    sp = jnp.maximum(x, 0.0) + jnp.log1p(jnp.exp(-jnp.abs(x)))
    o_ref[...] = (sp - _SHIFT).astype(o_ref.dtype)


def shifted_softplus(x: jax.Array, *, target_block_bytes: int = 2 * 1024 * 1024) -> jax.Array:
    """Applies softplus(x) - log(2) elementwise via a Pallas TPU kernel."""
    orig_shape = x.shape
    dtype = x.dtype
    n = int(x.size)
    if n == 0:
        return x

    itemsize = jnp.dtype(dtype).itemsize
    packing = max(1, 4 // itemsize)       # sublane packing factor (f32:1, bf16:2, ...)
    sublane_mult = 8 * packing            # row-tile alignment for this dtype

    flat = x.reshape(-1)
    rem = n % _LANES
    if rem:
        # Rare fallback: only pad up to the next 128-lane boundary (<=127 elems).
        flat = jnp.pad(flat, (0, _LANES - rem))
    rows = flat.shape[0] // _LANES
    x2d = flat.reshape(rows, _LANES)

    # ~2 MiB blocks, aligned to the dtype's sublane packing.
    target_rows = max(
        sublane_mult,
        (target_block_bytes // (_LANES * itemsize)) // sublane_mult * sublane_mult,
    )
    block_rows = rows if target_rows >= rows else target_rows

    # Keep at least 2 grid steps when the input is big enough to split
    # (v7x megacore: parallel grid axes are sharded across the 2 TensorCores).
    if pl.cdiv(rows, block_rows) < 2 and rows > 2 * sublane_mult:
        half = -(-rows // 2)
        block_rows = -(-half // sublane_mult) * sublane_mult

    grid = (pl.cdiv(rows, block_rows),)
    n_elems = rows * _LANES

    out2d = pl.pallas_call(
        _shifted_softplus_kernel,
        out_shape=jax.ShapeDtypeStruct((rows, _LANES), dtype),
        grid_spec=pltpu.PrefetchScalarGridSpec(
            num_scalar_prefetch=0,
            grid=grid,
            in_specs=[pl.BlockSpec((block_rows, _LANES), lambda i: (i, 0))],
            out_specs=pl.BlockSpec((block_rows, _LANES), lambda i: (i, 0)),
        ),
        compiler_params=pltpu.CompilerParams(
            dimension_semantics=("parallel",),
        ),
        cost_estimate=pl.CostEstimate(
            flops=5 * n_elems,
            transcendentals=2 * n_elems,        # exp + log1p per element
            bytes_accessed=2 * n_elems * itemsize,
        ),
    )(x2d)

    out_flat = out2d.reshape(-1)
    if rem:
        out_flat = out_flat[:n]
    return out_flat.reshape(orig_shape)


if __name__ == "__main__":
    key = jax.random.PRNGKey(0)

    # Primary small NCHW-shaped input consistent with typical module usage.
    x = jax.random.normal(key, (2, 4, 16, 16), dtype=jnp.float32) * 5.0
    y = jax.block_until_ready(shifted_softplus(x))
    ref = jax.nn.softplus(x) - math.log(2.0)
    assert y.shape == x.shape and y.dtype == x.dtype
    assert jnp.allclose(y, ref, atol=1e-5, rtol=1e-5), "mismatch vs reference (primary)"

    # Ragged size (not 128-aligned) exercises the minimal-pad fallback path.
    k1, k2 = jax.random.split(key)
    x_ragged = jax.random.normal(k1, (3, 5, 7, 11), dtype=jnp.float32) * 3.0
    y_ragged = jax.block_until_ready(shifted_softplus(x_ragged))
    ref_ragged = jax.nn.softplus(x_ragged) - math.log(2.0)
    assert jnp.allclose(y_ragged, ref_ragged, atol=1e-5, rtol=1e-5), "mismatch (ragged)"

    # Medium input exercises the multi-step parallel grid with large blocks.
    x_med = jax.random.normal(k2, (4, 32, 64, 64), dtype=jnp.float32) * 4.0
    y_med = jax.block_until_ready(shifted_softplus(x_med))
    ref_med = jax.nn.softplus(x_med) - math.log(2.0)
    assert jnp.allclose(y_med, ref_med, atol=1e-5, rtol=1e-5), "mismatch (medium)"

    print("KERNEL_OK")
</pallas_src>

<mosaic_0001>
module attributes {stable_mosaic.version = 11 : i64} {
  func.func @_shifted_softplus_kernel(%arg0: i32, %arg1: memref<16x128xf32, #tpu.memory_space<vmem>>, %arg2: memref<16x128xf32, #tpu.memory_space<vmem>>) attributes {dimension_semantics = [#tpu.dimension_semantics<parallel>], iteration_bounds = array<i64: 1>, scalar_prefetch = 0 : i64, scratch_operands = 0 : i64, tpu.core_type = #tpu.core_type<tc>, window_params = [{transform_indices = @transform_0, window_bounds = array<i64: 16, 128>}, {transform_indices = @transform_1, window_bounds = array<i64: 16, 128>}]} {
    %c0 = arith.constant 0 : index
    %c0_0 = arith.constant 0 : index
    %0 = vector.load %arg1[%c0, %c0_0] : memref<16x128xf32, #tpu.memory_space<vmem>>, vector<16x128xf32>
    %cst = arith.constant 0.000000e+00 : f32
    %1 = vector.broadcast %cst : f32 to vector<16x128xf32>
    %2 = arith.maximumf %0, %1 : vector<16x128xf32>
    %3 = math.absf %0 : vector<16x128xf32>
    %cst_1 = arith.constant 0.000000e+00 : f32
    %4 = vector.broadcast %cst_1 : f32 to vector<16x128xf32>
    %5 = arith.subf %4, %3 : vector<16x128xf32>
    %6 = math.exp %5 : vector<16x128xf32>
    %7 = math.log1p %6 : vector<16x128xf32>
    %8 = arith.addf %2, %7 : vector<16x128xf32>
    %cst_2 = arith.constant 0.693147182 : f32
    %9 = vector.broadcast %cst_2 : f32 to vector<16x128xf32>
    %10 = arith.subf %8, %9 : vector<16x128xf32>
    %c0_3 = arith.constant 0 : index
    %c0_4 = arith.constant 0 : index
    %11 = vector.load %arg2[%c0_3, %c0_4] : memref<16x128xf32, #tpu.memory_space<vmem>>, vector<16x128xf32>
    tpu.vector_store %arg2[%c0_3, %c0_4], %10 {strides = array<i32>} : memref<16x128xf32, #tpu.memory_space<vmem>>, vector<16x128xf32>,
    return
  }
  func.func @transform_0(%arg0: i32) -> (i32, i32) {
    %c0_i32 = arith.constant 0 : i32
    %c0_i32_0 = arith.constant 0 : i32
    return %arg0, %c0_i32 : i32, i32
  }
  func.func @transform_1(%arg0: i32) -> (i32, i32) {
    %c0_i32 = arith.constant 0 : i32
    %c0_i32_0 = arith.constant 0 : i32
    return %arg0, %c0_i32 : i32, i32
  }
}

</mosaic_0001>

<bundles_post_ra>
// kernel: tpu_custom_call.1
= control target key start
LH: loop header
LB: loop body
LE: loop exit
PB: predicated region body
PF: predicated region fallthrough
CT: control target
= control target key end

     0   :  { %6 = vsyncpa [#allocation3], 0  ;;  %s160_s0 = inlined_call_operand.hbm [shape: f32[16,128], index: 0, kind: input, shape index: {}]   ;;  %s161_s1 = inlined_call_operand.hbm [shape: f32[16,128], index: 1, kind: output, shape index: {}]  }
   0x1   :  { %7 = vsyncpa [#allocation4], 0  ;;  %s134_s6 = smov [#allocation2]  }
   0x2   :  { %s13_s7 = sshll.u32 %s134_s6, 4  ;;  %s14_s7 = int_to_ptr.vmem [resolvable:$true] %s13_s7 }
   0x3   :  { %s98_s8 = scalar_lea.vmem %s14_s7, 256  ;;  %p103_p1 = scmp.lt.s32.totalorder %s14_s7, %s14_s7 }
   0x4   :  { %p99_p0 = scmp.ne.s32.totalorder %s14_s7, %s98_s8  ;;  %p104_p2 = scmp.lt.s32.totalorder %s98_s8, %s98_s8 }
   0x6   :  { %p105_p3 = por %p104_p2, %p103_p1 }
   0x8   :  { %p106_p4 = pnand %p105_p3, %p99_p0 }
   0xa   :  { %109 = shalt.err (!%p106_p4)
}
   0xb   :  { %s135_s9 = smov 128   ;;  %s136_s10 = smov 8  }
   0xc   :  { %19 = dma.hbm_to_vmem [thread:$0]  %s160_s0, 256, %s14_s7, [#allocation3], %s135_s9, %s135_s9, %s136_s10  }
   0xd   :  { %130 = dma.done.wait [#allocation3], 256  }
   0xe   :  { %131 = vsyncadd [#allocation3], 4294967040  ;;  %v23_v0 = vld [vmem:[#allocation2] sm:$0xff]  ;;  %v24_v1 = vld [vmem:[#allocation2 + $0x8] sm:$0xff]  ;;  %s137_s0 = smov [#allocation5]  }
   0xf   :  { %v27_v2 = vand.u32 2147483647, %v23_v0  ;;  %v28_v3 = vand.u32 2147483647, %v24_v1  ;;  %v25_v20 = vmax.f32 %v23_v0, 0.0  ;;  %v26_v24 = vmax.f32 %v24_v1, 0.0 }
  0x10   :  { %s64_s13 = sshll.u32 %s137_s0, 4  ;;  %s65_s13 = int_to_ptr.vmem [resolvable:$true] %s64_s13 }
  0x11   :  { %v29_v4 = vsub.f32 0.0, %v27_v2  ;;  %v30_v5 = vsub.f32 0.0, %v28_v3  ;;  %s110_s14 = scalar_lea.vmem %s65_s13, 256  ;;  %p115_p6 = scmp.lt.s32.totalorder %s65_s13, %s65_s13 }
  0x12   :  { %p111_p5 = scmp.ne.s32.totalorder %s65_s13, %s110_s14  ;;  %p116_p7 = scmp.lt.s32.totalorder %s110_s14, %s110_s14 }
  0x13   :  { %v31_v6 = vmul.f32 1.442695, %v29_v4  ;;  %v33_v7 = vmul.f32 1.442695, %v30_v5 }
  0x14   :  { %p117_p8 = por %p116_p7, %p115_p6 }
  0x15   :  { %82 = vpow2.f32 %v31_v6 }
  0x16   :  { %84 = vpow2.f32 %v33_v7  ;;  %p118_p9 = pnand %p117_p8, %p111_p5 }
  0x22   :  { %v83_v8 = vpop.eup %82 }
  0x23   :  { %v85_v9 = vpop.eup %84  ;;  %v35_v10 = vadd.f32 1.0, %v83_v8  ;;  %v38_v12 = vmul.f32 -0.5, %v83_v8  ;;  %v41_v15 = vand.u32 2147483647, %v83_v8 }
  0x24   :  { %v44_v11 = vadd.f32 1.0, %v85_v9  ;;  %v47_v13 = vmul.f32 -0.5, %v85_v9  ;;  %v50_v17 = vand.u32 2147483647, %v85_v9 }
  0x25   :  { %86 = vlog2.f32 %v35_v10  ;;  %v39_v14 = vadd.f32 1.0, %v38_v12  ;;  %vm42_vm0 = vcmp.lt.f32.partialorder %v41_v15, 0.0004427343 }
  0x26   :  { %88 = vlog2.f32 %v44_v11  ;;  %v48_v16 = vadd.f32 1.0, %v47_v13  ;;  %vm51_vm1 = vcmp.lt.f32.partialorder %v50_v17, 0.0004427343 }
  0x27   :  { %v40_v18 = vmul.f32 %v83_v8, %v39_v14 }
  0x28   :  { %v49_v21 = vmul.f32 %v85_v9, %v48_v16 }
  0x32   :  { %v87_v19 = vpop.eup %86 }
  0x33   :  { %v89_v22 = vpop.eup %88  ;;  %v37_v23 = vmul.f32 0.6931472, %v87_v19 }
  0x34   :  { %v46_v25 = vmul.f32 0.6931472, %v89_v22 }
  0x35   :  { %v43_v26 = vsel %vm42_vm0, %v40_v18, %v37_v23 }
  0x36   :  { %v53_v27 = vadd.f32 %v43_v26, %v25_v20  ;;  %v52_v28 = vsel %vm51_vm1, %v49_v21, %v46_v25 }
  0x37   :  { %v54_v29 = vadd.f32 %v52_v28, %v26_v24 }
  0x38   :  { %v76_v30 = vadd.f32 -0.6931472, %v53_v27 }
  0x39   :  { %v77_v31 = vadd.f32 -0.6931472, %v54_v29 }
  0x3a   :  { %57 = vst [vmem:[#allocation5] sm:$0xff] %v76_v30 }
  0x3b   :  { %58 = vst [vmem:[#allocation5 + $0x8] sm:$0xff] %v77_v31 }
  0x3c   :  { %121 = shalt.err (!%p118_p9)
}
  0x3d   :  { %70 = dma.vmem_to_hbm [thread:$0]  %s65_s13, 256, %s161_s1, [#allocation4], %s135_s9, %s135_s9, %s136_s10  }
  0x3e   :  { %132 = dma.done.wait [#allocation4], 256  }
  0x3f   :  { %133 = vsyncadd [#allocation4], 4294967040 }
  0x40   :  { %74 = vsyncpa [#allocation3], 1 }
  0x41   :  { %75 = vsyncpa [#allocation4], 1 }

</bundles_post_ra>
